<compile_context>
chip_gen: v5e
topology: v5e:2x2
jax: 0.10.0
libtpu: 0.0.40
codegen_flags: <defaults>
</compile_context>

<pallas_src>
import jax
import jax.numpy as jnp
from jax.experimental import pallas as pl
from jax.experimental.pallas import tpu as pltpu

BN_EPS = 1e-5


def _round_up(x, m):
    return ((x + m - 1) // m) * m


def _vmem_capacity_bytes():
    """Physical VMEM capacity; conservative (v7x-safe) fallback."""
    try:
        info = pltpu.get_tpu_info()
        cap = getattr(info, "vmem_capacity_bytes", None)
        if cap:
            return int(cap)
    except Exception:
        pass
    return 64 * 1024 * 1024


# ----------------------------------------------------------------------------
# Kernels
# ----------------------------------------------------------------------------
def _mlp_kernel_resident(x_ref, w1_ref, b1_ref, w2_ref, b2_ref, o_ref):
    # fc1 (BatchNorm already folded into W1'/b1').  f32 accumulation on the MXU.
    h = jnp.dot(x_ref[...], w1_ref[...], preferred_element_type=jnp.float32)
    # Bias + ReLU epilogue in f32 (v5e VPU has no bf16 support).
    h = jnp.maximum(h + b1_ref[...], 0.0)
    # Dropout(p=0.4) is identity at inference time.
    out = jnp.dot(h.astype(w2_ref.dtype), w2_ref[...],
                  preferred_element_type=jnp.float32)
    o_ref[...] = (out + b2_ref[...]).astype(o_ref.dtype)


def _mlp_kernel_htiled(x_ref, w1_ref, b1_ref, w2_ref, b2_ref, o_ref, acc_ref):
    # Grid = (batch tiles [parallel], hidden tiles [arbitrary, reduction]).
    j = pl.program_id(1)

    @pl.when(j == 0)
    def _():
        acc_ref[...] = jnp.zeros_like(acc_ref)

    h = jnp.dot(x_ref[...], w1_ref[...], preferred_element_type=jnp.float32)
    h = jnp.maximum(h + b1_ref[...], 0.0)
    acc_ref[...] += jnp.dot(h.astype(w2_ref.dtype), w2_ref[...],
                            preferred_element_type=jnp.float32)

    @pl.when(j == pl.num_programs(1) - 1)
    def _():
        o_ref[...] = (acc_ref[...] + b2_ref[...]).astype(o_ref.dtype)


# ----------------------------------------------------------------------------
# One-time parameter preparation (BN fold + padding) -- hoisted out of forward
# ----------------------------------------------------------------------------
def prepare_params(params, *, compute_dtype=jnp.bfloat16):
    """Fold BatchNorm1d (eval) into fc1 and pad all weights/biases once.

    Weights are stored transposed vs. PyTorch, i.e. (in, out).
    `compute_dtype` is the MXU operand dtype (bf16 default / f32); accumulation
    and the bias/ReLU epilogue are always f32.
    """
    w1, b1, gamma, beta, run_mean, run_var, w2, b2 = params
    b1 = jnp.reshape(b1, (1, -1))
    gamma = jnp.reshape(gamma, (1, -1))
    beta = jnp.reshape(beta, (1, -1))
    run_mean = jnp.reshape(run_mean, (1, -1))
    run_var = jnp.reshape(run_var, (1, -1))
    b2 = jnp.reshape(b2, (1, -1))

    D_in, H = w1.shape
    D_out = w2.shape[1]

    # Fold BN(eval):  y = (x@W1 + b1 - mean) * s + beta,  s = gamma*rsqrt(var+eps)
    s = gamma * jax.lax.rsqrt(run_var + BN_EPS)          # (1, H)
    w1_f = w1 * s                                        # column-wise scale
    b1_f = (b1 - run_mean) * s + beta                    # (1, H)

    # Lane-dense padding: D_in / H / D_out -> multiples of 128.
    D_in_p = _round_up(D_in, 128)
    H_p = _round_up(H, 128)
    D_out_p = _round_up(D_out, 128)

    cd = compute_dtype
    w1_p = jnp.zeros((D_in_p, H_p), cd).at[:D_in, :H].set(w1_f.astype(cd))
    b1_p = jnp.zeros((1, H_p), jnp.float32).at[:, :H].set(b1_f.astype(jnp.float32))
    w2_p = jnp.zeros((H_p, D_out_p), cd).at[:H, :D_out].set(w2.astype(cd))
    b2_p = jnp.zeros((1, D_out_p), jnp.float32).at[:, :D_out].set(b2.astype(jnp.float32))

    return {
        "w1": w1_p, "b1": b1_p, "w2": w2_p, "b2": b2_p,
        "dims": (D_in, H, D_out),
        "compute_dtype": cd,
    }


# ----------------------------------------------------------------------------
# Tile planning
# ----------------------------------------------------------------------------
def _plan_tiles(B, D_in_p, H_p, D_out_p, cd_size, out_size, budget,
                batch_align, max_tb, max_hidden_tile):
    """Returns (mode, TB, TH, vmem_footprint_bytes)."""

    def resident_bytes(tb):
        return (2 * tb * D_in_p * cd_size          # x tiles   (double-buffered)
                + 2 * tb * D_out_p * out_size      # out tiles (double-buffered)
                + 2 * D_in_p * H_p * cd_size       # W1' (2x buffer allocation)
                + 2 * H_p * 4                      # b1'
                + 2 * H_p * D_out_p * cd_size      # W2
                + 2 * D_out_p * 4                  # b2
                + tb * H_p * 4                     # f32 hidden intermediate
                + tb * D_out_p * 4)                # f32 fc2 result before cast

    def htiled_bytes(tb, th):
        return (2 * tb * D_in_p * cd_size
                + 2 * tb * D_out_p * out_size
                + 2 * D_in_p * th * cd_size        # W1 H-tile
                + 2 * th * 4                       # b1 H-tile
                + 2 * th * D_out_p * cd_size       # W2 H-tile
                + 2 * D_out_p * 4
                + tb * D_out_p * 4                 # f32 accumulator scratch
                + tb * th * 4)                     # f32 hidden intermediate

    b_align = _round_up(B, batch_align)
    tb0 = _round_up(min(max_tb, b_align), batch_align)

    def split_for_two_cores(tb):
        # v7x has 2 TensorCores; keep >= 2 batch tiles when the batch allows.
        if tb >= b_align and b_align >= 2 * batch_align:
            tb = _round_up((b_align + 1) // 2, batch_align)
        return tb

    if max_hidden_tile is None:
        tb = tb0
        while tb > batch_align and resident_bytes(tb) > budget:
            tb = _round_up(tb // 2, batch_align)
        if resident_bytes(tb) <= budget:
            tb = split_for_two_cores(tb)
            return "resident", tb, H_p, resident_bytes(tb)

    # H-tiled fallback (or forced via max_hidden_tile), e.g. for v7x 64 MiB VMEM.
    th_cap = H_p if max_hidden_tile is None else _round_up(
        min(max_hidden_tile, H_p), 128)
    m = H_p // 128
    th_candidates = [128 * d for d in range(m, 0, -1)
                     if m % d == 0 and 128 * d <= th_cap]
    if not th_candidates:
        th_candidates = [128]
    tb = tb0
    th = th_candidates[-1]
    for cand in th_candidates:                      # largest-first
        if htiled_bytes(tb0, cand) <= budget:
            th = cand
            break
    while tb > batch_align and htiled_bytes(tb, th) > budget:
        tb = _round_up(tb // 2, batch_align)
    tb = split_for_two_cores(tb)
    return "htiled", tb, th, htiled_bytes(tb, th)


# ----------------------------------------------------------------------------
# Forward
# ----------------------------------------------------------------------------
def mlp_classifier_forward(x, prepared, *, out_dtype=jnp.float32,
                           max_block_batch=512, max_hidden_tile=None):
    """Fused fc1 -> BN(eval) -> ReLU -> fc2 on prepared (folded/padded) params."""
    w1_p, b1_p = prepared["w1"], prepared["b1"]
    w2_p, b2_p = prepared["w2"], prepared["b2"]
    D_in, H, D_out = prepared["dims"]
    cd = prepared["compute_dtype"]

    D_in_p, H_p = w1_p.shape
    D_out_p = w2_p.shape[1]
    B = x.shape[0]
    assert x.shape[1] == D_in

    cd_size = jnp.dtype(cd).itemsize
    out_size = jnp.dtype(out_dtype).itemsize
    batch_align = 16 if cd_size < 4 else 8

    vmem_cap = _vmem_capacity_bytes()
    budget = int(0.70 * vmem_cap)       # ~90 MiB on v5e/v6e, ~45 MiB on v7x

    mode, TB, TH, footprint = _plan_tiles(
        B, D_in_p, H_p, D_out_p, cd_size, out_size, budget,
        batch_align, max_block_batch, max_hidden_tile)

    B_p = _round_up(B, TB)
    n_batch_tiles = B_p // TB

    # Per-call input padding only (weights were padded once in prepare_params).
    if B_p == B and D_in_p == D_in and x.dtype == cd:
        x_p = x
    else:
        x_p = jnp.zeros((B_p, D_in_p), cd).at[:B, :D_in].set(x.astype(cd))

    vmem_limit = int(min(0.9 * vmem_cap,
                         max(footprint * 1.25 + (2 << 20), 32 << 20)))

    flops = 2 * B_p * (D_in_p * H_p + H_p * D_out_p)
    weight_bytes = (w1_p.size + w2_p.size) * cd_size + (b1_p.size + b2_p.size) * 4
    if mode == "htiled":
        weight_bytes *= n_batch_tiles           # weights re-streamed per batch tile
    bytes_accessed = x_p.size * cd_size + weight_bytes + B_p * D_out_p * out_size
    cost = pl.CostEstimate(flops=flops, transcendentals=0,
                           bytes_accessed=bytes_accessed)

    if mode == "resident":
        out_p = pl.pallas_call(
            _mlp_kernel_resident,
            out_shape=jax.ShapeDtypeStruct((B_p, D_out_p), out_dtype),
            grid=(n_batch_tiles,),
            in_specs=[
                pl.BlockSpec((TB, D_in_p), lambda i: (i, 0)),    # x: batch tiled
                pl.BlockSpec((D_in_p, H_p), lambda i: (0, 0)),   # W1': resident
                pl.BlockSpec((1, H_p), lambda i: (0, 0)),        # b1': resident
                pl.BlockSpec((H_p, D_out_p), lambda i: (0, 0)),  # W2 : resident
                pl.BlockSpec((1, D_out_p), lambda i: (0, 0)),    # b2 : resident
            ],
            out_specs=pl.BlockSpec((TB, D_out_p), lambda i: (i, 0)),
            compiler_params=pltpu.CompilerParams(
                dimension_semantics=("parallel",),
                vmem_limit_bytes=vmem_limit),
            cost_estimate=cost,
        )(x_p, w1_p, b1_p, w2_p, b2_p)
    else:
        n_h = H_p // TH
        out_p = pl.pallas_call(
            _mlp_kernel_htiled,
            out_shape=jax.ShapeDtypeStruct((B_p, D_out_p), out_dtype),
            grid=(n_batch_tiles, n_h),
            in_specs=[
                pl.BlockSpec((TB, D_in_p), lambda i, j: (i, 0)),   # x (held over j)
                pl.BlockSpec((D_in_p, TH), lambda i, j: (0, j)),   # W1' H-tile
                pl.BlockSpec((1, TH), lambda i, j: (0, j)),        # b1' H-tile
                pl.BlockSpec((TH, D_out_p), lambda i, j: (j, 0)),  # W2  H-tile
                pl.BlockSpec((1, D_out_p), lambda i, j: (0, 0)),   # b2
            ],
            out_specs=pl.BlockSpec((TB, D_out_p), lambda i, j: (i, 0)),
            scratch_shapes=[pltpu.VMEM((TB, D_out_p), jnp.float32)],
            compiler_params=pltpu.CompilerParams(
                dimension_semantics=("parallel", "arbitrary"),
                vmem_limit_bytes=vmem_limit),
            cost_estimate=cost,
        )(x_p, w1_p, b1_p, w2_p, b2_p)

    return out_p[:B, :D_out]


# ----------------------------------------------------------------------------
# Host-side init / reference
# ----------------------------------------------------------------------------
def init_params(key, input_dim, hidden_dim, output_dim):
    """Deterministic parameter init mirroring the PyTorch module's shapes
    (weights stored transposed, i.e. (in, out))."""
    k1, k2, k3, k4, k5, k6 = jax.random.split(key, 6)
    lim1 = 1.0 / jnp.sqrt(input_dim)
    w1 = jax.random.uniform(k1, (input_dim, hidden_dim), jnp.float32, -lim1, lim1)
    b1 = jax.random.uniform(k2, (1, hidden_dim), jnp.float32, -lim1, lim1)
    gamma = jnp.ones((1, hidden_dim), jnp.float32)
    beta = jnp.zeros((1, hidden_dim), jnp.float32)
    run_mean = 0.1 * jax.random.normal(k3, (1, hidden_dim), jnp.float32)
    run_var = jnp.ones((1, hidden_dim), jnp.float32) + 0.05 * jax.random.uniform(
        k4, (1, hidden_dim), jnp.float32)
    lim2 = 1.0 / jnp.sqrt(hidden_dim)
    w2 = jax.random.uniform(k5, (hidden_dim, output_dim), jnp.float32, -lim2, lim2)
    b2 = jax.random.uniform(k6, (1, output_dim), jnp.float32, -lim2, lim2)
    return (w1, b1, gamma, beta, run_mean, run_var, w2, b2)


def reference_forward(x, params):
    """Plain-JAX reference (matches the PyTorch module in eval mode)."""
    w1, b1, gamma, beta, run_mean, run_var, w2, b2 = params
    h = x @ w1 + b1
    h = (h - run_mean) / jnp.sqrt(run_var + BN_EPS) * gamma + beta
    h = jnp.maximum(h, 0.0)   # dropout is identity in eval
    return h @ w2 + b2


if __name__ == "__main__":
    key = jax.random.PRNGKey(0)
    kx, kp, kx2, kp2 = jax.random.split(key, 4)

    # --- Test 1: default bf16 MXU operands, weights fully resident -----------
    batch, input_dim, hidden_dim, output_dim = 8, 16, 32, 4
    x = jax.random.normal(kx, (batch, input_dim), jnp.float32)
    params = init_params(kp, input_dim, hidden_dim, output_dim)
    ref = reference_forward(x, params)

    prep_bf16 = prepare_params(params)                       # bf16 by default
    out = jax.block_until_ready(mlp_classifier_forward(x, prep_bf16))
    assert out.shape == (batch, output_dim)
    assert jnp.allclose(out, ref, atol=1e-1, rtol=1e-1), "bf16 resident path mismatch"

    # --- Test 2: f32 operands, tight tolerance --------------------------------
    prep_f32 = prepare_params(params, compute_dtype=jnp.float32)
    out_f32 = jax.block_until_ready(mlp_classifier_forward(x, prep_f32))
    assert jnp.allclose(out_f32, ref, atol=1e-4, rtol=1e-4), "f32 resident path mismatch"

    # --- Test 3: H-tiled fallback (forced), compared against resident path ---
    batch2, input_dim2, hidden_dim2, output_dim2 = 64, 48, 320, 10
    x2 = jax.random.normal(kx2, (batch2, input_dim2), jnp.float32)
    params2 = init_params(kp2, input_dim2, hidden_dim2, output_dim2)
    ref2 = reference_forward(x2, params2)
    prep2 = prepare_params(params2, compute_dtype=jnp.float32)

    out2_res = jax.block_until_ready(mlp_classifier_forward(x2, prep2))
    out2_ht = jax.block_until_ready(
        mlp_classifier_forward(x2, prep2, max_hidden_tile=128))
    assert out2_ht.shape == (batch2, output_dim2)
    assert jnp.allclose(out2_ht, out2_res, atol=1e-4, rtol=1e-4), \
        "H-tiled path disagrees with resident path"
    assert jnp.allclose(out2_ht, ref2, atol=5e-2, rtol=5e-2), \
        "H-tiled path disagrees with reference"

    print("KERNEL_OK")
</pallas_src>

<mosaic_0001>
module attributes {stable_mosaic.version = 11 : i64} {
  func.func @_mlp_kernel_resident(%arg0: i32, %arg1: memref<16x128xbf16, #tpu.memory_space<vmem>>, %arg2: memref<128x128xbf16, #tpu.memory_space<vmem>>, %arg3: memref<1x128xf32, #tpu.memory_space<vmem>>, %arg4: memref<128x128xbf16, #tpu.memory_space<vmem>>, %arg5: memref<1x128xf32, #tpu.memory_space<vmem>>, %arg6: memref<16x128xf32, #tpu.memory_space<vmem>>) attributes {dimension_semantics = [#tpu.dimension_semantics<parallel>], iteration_bounds = array<i64: 1>, scalar_prefetch = 0 : i64, scratch_operands = 0 : i64, tpu.core_type = #tpu.core_type<tc>, window_params = [{transform_indices = @transform_0, window_bounds = array<i64: 16, 128>}, {pipeline_mode = #tpu.pipeline_mode<synchronous>, transform_indices = @transform_1, window_bounds = array<i64: 128, 128>}, {pipeline_mode = #tpu.pipeline_mode<synchronous>, transform_indices = @transform_2, window_bounds = array<i64: 1, 128>}, {pipeline_mode = #tpu.pipeline_mode<synchronous>, transform_indices = @transform_3, window_bounds = array<i64: 128, 128>}, {pipeline_mode = #tpu.pipeline_mode<synchronous>, transform_indices = @transform_4, window_bounds = array<i64: 1, 128>}, {transform_indices = @transform_5, window_bounds = array<i64: 16, 128>}]} {
    %c0 = arith.constant 0 : index
    %c0_0 = arith.constant 0 : index
    %0 = vector.load %arg1[%c0, %c0_0] : memref<16x128xbf16, #tpu.memory_space<vmem>>, vector<16x128xbf16>
    %c0_1 = arith.constant 0 : index
    %c0_2 = arith.constant 0 : index
    %1 = vector.load %arg2[%c0_1, %c0_2] : memref<128x128xbf16, #tpu.memory_space<vmem>>, vector<128x128xbf16>
    %cst = arith.constant dense<0.000000e+00> : vector<16x128xf32>
    %2 = tpu.matmul %0, %1, %cst {dimension_numbers = #tpu.dot_dimension_numbers<[1], [0], [0], [1], [0, 0, 1, 1], [], []>} : vector<16x128xbf16>, vector<128x128xbf16>, vector<16x128xf32> -> vector<16x128xf32>
    %c0_3 = arith.constant 0 : index
    %c0_4 = arith.constant 0 : index
    %3 = vector.load %arg3[%c0_3, %c0_4] : memref<1x128xf32, #tpu.memory_space<vmem>>, vector<1x128xf32>
    %4 = vector.broadcast %3 : vector<1x128xf32> to vector<16x128xf32>
    %5 = arith.addf %2, %4 : vector<16x128xf32>
    %cst_5 = arith.constant 0.000000e+00 : f32
    %6 = vector.broadcast %cst_5 : f32 to vector<16x128xf32>
    %7 = arith.maximumf %5, %6 : vector<16x128xf32>
    %8 = arith.truncf %7 : vector<16x128xf32> to vector<16x128xbf16>
    %c0_6 = arith.constant 0 : index
    %c0_7 = arith.constant 0 : index
    %9 = vector.load %arg4[%c0_6, %c0_7] : memref<128x128xbf16, #tpu.memory_space<vmem>>, vector<128x128xbf16>
    %cst_8 = arith.constant dense<0.000000e+00> : vector<16x128xf32>
    %10 = tpu.matmul %8, %9, %cst_8 {dimension_numbers = #tpu.dot_dimension_numbers<[1], [0], [0], [1], [0, 0, 1, 1], [], []>} : vector<16x128xbf16>, vector<128x128xbf16>, vector<16x128xf32> -> vector<16x128xf32>
    %c0_9 = arith.constant 0 : index
    %c0_10 = arith.constant 0 : index
    %11 = vector.load %arg5[%c0_9, %c0_10] : memref<1x128xf32, #tpu.memory_space<vmem>>, vector<1x128xf32>
    %12 = vector.broadcast %11 : vector<1x128xf32> to vector<16x128xf32>
    %13 = arith.addf %10, %12 : vector<16x128xf32>
    %c0_11 = arith.constant 0 : index
    %c0_12 = arith.constant 0 : index
    %14 = vector.load %arg6[%c0_11, %c0_12] : memref<16x128xf32, #tpu.memory_space<vmem>>, vector<16x128xf32>
    tpu.vector_store %arg6[%c0_11, %c0_12], %13 {strides = array<i32>} : memref<16x128xf32, #tpu.memory_space<vmem>>, vector<16x128xf32>,
    return
  }
  func.func @transform_0(%arg0: i32) -> (i32, i32) {
    %c0_i32 = arith.constant 0 : i32
    %c0_i32_0 = arith.constant 0 : i32
    return %arg0, %c0_i32 : i32, i32
  }
  func.func @transform_1(%arg0: i32) -> (i32, i32) {
    %c0_i32 = arith.constant 0 : i32
    %c0_i32_0 = arith.constant 0 : i32
    %c0_i32_1 = arith.constant 0 : i32
    return %c0_i32, %c0_i32_0 : i32, i32
  }
  func.func @transform_2(%arg0: i32) -> (i32, i32) {
    %c0_i32 = arith.constant 0 : i32
    %c0_i32_0 = arith.constant 0 : i32
    %c0_i32_1 = arith.constant 0 : i32
    return %c0_i32, %c0_i32_0 : i32, i32
  }
  func.func @transform_3(%arg0: i32) -> (i32, i32) {
    %c0_i32 = arith.constant 0 : i32
    %c0_i32_0 = arith.constant 0 : i32
    %c0_i32_1 = arith.constant 0 : i32
    return %c0_i32, %c0_i32_0 : i32, i32
  }
  func.func @transform_4(%arg0: i32) -> (i32, i32) {
    %c0_i32 = arith.constant 0 : i32
    %c0_i32_0 = arith.constant 0 : i32
    %c0_i32_1 = arith.constant 0 : i32
    return %c0_i32, %c0_i32_0 : i32, i32
  }
  func.func @transform_5(%arg0: i32) -> (i32, i32) {
    %c0_i32 = arith.constant 0 : i32
    %c0_i32_0 = arith.constant 0 : i32
    return %arg0, %c0_i32 : i32, i32
  }
}

</mosaic_0001>

<bundles_post_ra>
// kernel: tpu_custom_call.1
= control target key start
LH: loop header
LB: loop body
LE: loop exit
PB: predicated region body
PF: predicated region fallthrough
CT: control target
= control target key end

     0   :  { %10 = vsyncpa [#allocation3], 0  ;;  %s518_s0 = inlined_call_operand.hbm [shape: bf16[16,128], index: 0, kind: input, shape index: {}]   ;;  %s519_s1 = inlined_call_operand.hbm [shape: bf16[128,128], index: 1, kind: input, shape index: {}]   ;;  %s520_s2 = inlined_call_operand.vmem [shape: f32[1,128], index: 2, kind: input, shape index: {}]   ;;  %s521_s3 = inlined_call_operand.hbm [shape: bf16[128,128], index: 3, kind: input, shape index: {}]   ;;  %s522_s4 = inlined_call_operand.vmem [shape: f32[1,128], index: 4, kind: input, shape index: {}]   ;;  %s523_s5 = inlined_call_operand.hbm [shape: f32[16,128], index: 5, kind: output, shape index: {}]  }
   0x1   :  { %11 = vsyncpa [#allocation6], 0 }
   0x2   :  { %12 = vsyncpa [#allocation4], 0  ;;  %s30_s20 = sshll.u32 %s519_s1, 4  ;;  %s462_s21 = smov [#allocation5]   ;;  %s31_s20 = int_to_ptr.hbm [resolvable:$true] %s30_s20 }
   0x3   :  { %s32_s22 = sshll.u32 %s462_s21, 4  ;;  %s17_s25 = sshll.u32 %s518_s0, 4  ;;  %s33_s22 = int_to_ptr.vmem [resolvable:$true] %s32_s22  ;;  %s18_s25 = int_to_ptr.hbm [resolvable:$true] %s17_s25 }
   0x4   :  { %s463_s26 = smov 64   ;;  %s464_s27 = smov 4  }
   0x5   :  { %38 = dma.hbm_to_vmem [thread:$0]  %s31_s20, 1024, %s33_s22, [#allocation6], %s463_s26, %s463_s26, %s464_s27  }
   0x6   :  { %s465_s28 = smov [#allocation2]   ;;  %s45_s7 = sshll.u32 %s521_s3, 4  ;;  %s46_s7 = int_to_ptr.hbm [resolvable:$true] %s45_s7 }
   0x7   :  { %s19_s29 = sshll.u32 %s465_s28, 4  ;;  %s466_s1 = smov [#allocation7]   ;;  %s20_s29 = int_to_ptr.vmem [resolvable:$true] %s19_s29 }
   0x8   :  { %25 = dma.hbm_to_vmem [thread:$0]  %s18_s25, 128, %s20_s29, [#allocation3], %s463_s26, %s463_s26, %s464_s27  }
   0x9   :  { %s47_s8 = sshll.u32 %s466_s1, 4  ;;  %s48_s8 = int_to_ptr.vmem [resolvable:$true] %s47_s8 }
   0xa   :  { %53 = dma.hbm_to_vmem [thread:$0]  %s46_s7, 1024, %s48_s8, [#allocation6], %s463_s26, %s463_s26, %s464_s27  }
   0xb   :  { %456 = dma.done.wait [#allocation3], 128  }
   0xc   :  { %457 = vsyncadd [#allocation3], 4294967168 }
   0xd   :  { %458 = dma.done.wait [#allocation6], 2048  }
   0xe   :  { %459 = vsyncadd [#allocation6], 4294965248  ;;  %v341_v0 = vld [vmem:[#allocation5 + $0x38] sm:$0xff]  ;;  %v340_v1 = vld [vmem:[#allocation5 + $0x30] sm:$0xff]  ;;  %s467_s11 = smov [#allocation8]   ;;  %s468_s15 = smov 128  }
   0xf   :  { %144 = vmatpush.bf16.msra.mxu0 %v341_v0  ;;  %v349_v2 = vld [vmem:[#allocation7 + $0x38] sm:$0xff]  ;;  %v348_v3 = vld [vmem:[#allocation7 + $0x30] sm:$0xff]  ;;  %v339_v4 = vld [vmem:[#allocation5 + $0x28] sm:$0xff]  ;;  %s249_s12 = sshll.u32 %s467_s11, 4  ;;  %s469_s16 = smov 8   ;;  %s250_s12 = int_to_ptr.vmem [resolvable:$true] %s249_s12 }
  0x10   :  { %229 = vmatpush.bf16.msra.mxu1 %v349_v2  ;;  %v347_v5 = vld [vmem:[#allocation7 + $0x28] sm:$0xff]  ;;  %v338_v6 = vld [vmem:[#allocation5 + $0x20] sm:$0xff]  ;;  %v337_v8 = vld [vmem:[#allocation5 + $0x18] sm:$0xff] }
  0x11   :  { %v346_v7 = vld [vmem:[#allocation7 + $0x20] sm:$0xff]  ;;  %v336_v9 = vld [vmem:[#allocation5 + $0x10] sm:$0xff]  ;;  %v335_v10 = vld [vmem:[#allocation5 + $0x8] sm:$0xff] }
  0x12   :  { %v334_v11 = vld [vmem:[#allocation5] sm:$0xff]  ;;  %v333_v12 = vld [vmem:[#allocation2] sm:$0xff]  ;;  %v344_v14 = vld [vmem:[#allocation7 + $0x10] sm:$0xff] }
  0x13   :  { %145 = vmatpush.bf16.msra.mxu0 %v340_v1  ;;  %v345_v13 = vld [vmem:[#allocation7 + $0x18] sm:$0xff]  ;;  %v343_v15 = vld [vmem:[#allocation7 + $0x8] sm:$0xff]  ;;  %v342_v16 = vld [vmem:[#allocation7] sm:$0xff] }
  0x14   :  { %230 = vmatpush.bf16.msra.mxu1 %v348_v3  ;;  %v358_v18 = vld [vmem:[%s520_s2] ss:$0 sm:$0xff]  ;;  %s251_s2 = sshll.u32 %s523_s5, 4  ;;  %s252_s2 = int_to_ptr.hbm [resolvable:$true] %s251_s2 }
  0x15   :  { %v359_v25 = vld [vmem:[%s522_s4] ss:$0 sm:$0xff] }
  0x17   :  { %146 = vmatpush.bf16.msra.mxu0 %v339_v4 }
  0x18   :  { %231 = vmatpush.bf16.msra.mxu1 %v347_v5 }
  0x1b   :  { %147 = vmatpush.bf16.msra.mxu0 %v338_v6 }
  0x1c   :  { %232 = vmatpush.bf16.msra.mxu1 %v346_v7 }
  0x1f   :  { %148 = vmatpush.bf16.msra.mxu0 %v337_v8 }
  0x20   :  { %233 = vmatpush.bf16.msra.mxu1 %v345_v13 }
  0x23   :  { %149 = vmatpush.bf16.msra.mxu0 %v336_v9 }
  0x24   :  { %234 = vmatpush.bf16.msra.mxu1 %v344_v14 }
  0x27   :  { %150 = vmatpush.bf16.msra.mxu0 %v335_v10 }
  0x28   :  { %235 = vmatpush.bf16.msra.mxu1 %v343_v15 }
  0x2b   :  { %151 = vmatpush.bf16.msra.mxu0 %v334_v11 }
  0x2c   :  { %236 = vmatpush.bf16.msra.mxu1 %v342_v16 }
  0x2e   :  { %152 = vmatmul.bf16.vlgmr.msra.gmra.mxu0 %v333_v12 }
  0xab   :  { %v153_v17 = vpop.f32.mrf.mxu0 }
  0xac   :  { %v154_v19 = vadd.f32 %v358_v18, %v153_v17 }
  0xae   :  { %v158_v22 = vmax.f32 %v154_v19, 0.0 }
  0xb3   :  { %v155_v20 = vpop.f32.mrf.mxu0 }
  0xb4   :  { %v156_v21 = vadd.f32 %v358_v18, %v155_v20 }
  0xb6   :  { %v159_v23 = vmax.f32 %v156_v21, 0.0 }
  0xb8   :  { %v160_v24 = vpack.c.bf16 %v159_v23, %v158_v22 }
  0xba   :  { %237 = vmatmul.bf16.vlgmr.msra.gmra.mxu1 %v160_v24 }
 0x137   :  { %v238_v26 = vpop.f32.mrf.mxu1 }
 0x138   :  { %v239_v27 = vadd.f32 %v359_v25, %v238_v26 }
 0x13a   :  { %243 = vst [vmem:[#allocation8] sm:$0xff] %v239_v27 }
 0x13f   :  { %v240_v28 = vpop.f32.mrf.mxu1 }
 0x140   :  { %v241_v29 = vadd.f32 %v359_v25, %v240_v28 }
 0x142   :  { %244 = vst [vmem:[#allocation8 + $0x8] sm:$0xff] %v241_v29 }
 0x143   :  { %257 = dma.vmem_to_hbm [thread:$0]  %s250_s12, 256, %s252_s2, [#allocation4], %s468_s15, %s468_s15, %s469_s16  }
 0x144   :  { %460 = dma.done.wait [#allocation4], 256  }
 0x145   :  { %461 = vsyncadd [#allocation4], 4294967040 }
 0x146   :  { %262 = vsyncpa [#allocation3], 1 }
 0x147   :  { %263 = vsyncpa [#allocation6], 1 }
 0x148   :  { %264 = vsyncpa [#allocation4], 1 }

</bundles_post_ra>
